<compile_context>
chip_gen: v7x
topology: tpu7x:2x2x1
jax: 0.10.0
libtpu: 0.0.40
codegen_flags: <defaults>
</compile_context>

<pallas_src>
import math

import jax
import jax.numpy as jnp
from jax.experimental import pallas as pl
from jax.experimental.pallas import tpu as pltpu

_LANES = 128
# ~2 MiB per block: ≥85% of HBM roofline on v5e/v6e/v7x, and with in+out each
# double-buffered (~8 MiB VMEM) it fits v5e's 16 MiB scoped default.
_TARGET_BLOCK_BYTES = 2 * 1024 * 1024
# Below this the pallas_call fixed cost (+ ~0.35 us/grid step) dominates; the
# XLA broadcast-mul is already optimal for tiny activations.
_SMALL_FALLBACK_BYTES = 256 * 1024


def _drop_path_kernel(keep_ref, scale_ref, x_ref, o_ref):
    """One grid step handles one (1, tile_rows, 128) lane-dense tile of one sample.

    keep_ref  : SMEM (B,) int32   1 if the sample survives (used only by the index_map)
    scale_ref : SMEM (B,) float32 1/keep_prob if kept else 0
    x_ref     : VMEM (1, tile_rows, 128) input tile
    o_ref     : VMEM (1, tile_rows, 128) output tile
    """
    del keep_ref  # consumed by the input index_map
    b = pl.program_id(0)
    scale = scale_ref[b].astype(o_ref.dtype)  # native-dtype multiply (bf16 VALU on v6e/v7x)
    o_ref[...] = x_ref[...] * scale


def _xla_drop_path(x, scale):
    return x * scale.astype(x.dtype).reshape((-1,) + (1,) * (x.ndim - 1))


def drop_path(x: jax.Array, key: jax.Array, drop_prob: float, training: bool) -> jax.Array:
    """Functional DropPath matching DropPath.drop_path_f semantics."""
    if drop_prob == 0.0 or not training:
        return x

    keep_prob = 1.0 - drop_prob
    b = x.shape[0]
    chw = math.prod(x.shape[1:])

    # Per-sample Bernoulli(keep_prob) draws; scale = 1/keep_prob for survivors.
    u = jax.random.uniform(key, (b,), dtype=jnp.float32)
    keep = u < jnp.float32(keep_prob)
    scale = jnp.where(keep, jnp.float32(1.0 / keep_prob), jnp.float32(0.0))

    itemsize = x.dtype.itemsize
    min_rows = max(8, 32 // itemsize)  # sublane packing: 8 (f32), 16 (bf16), 32 (int8/fp8)
    nbytes = x.size * itemsize
    rows = chw // _LANES

    use_kernel = (
        chw % _LANES == 0               # lane-dense, zero-copy reshape (no wrapper pad/slice)
        and rows >= min_rows            # at least one packed sublane group per sample
        and nbytes >= _SMALL_FALLBACK_BYTES
    )
    if not use_kernel:
        # TODO(synk): ragged (chw % 128 != 0) tails could be masked in-kernel with
        # pltpu.store; for those and for tiny tensors XLA's fused broadcast-mul is
        # already bandwidth-optimal, so we dispatch there instead of padding.
        return _xla_drop_path(x, scale)

    # Tile size in bytes, rounded to the dtype's sublane packing, capped so
    # tile_rows <= rows (the last tile may be partial; Pallas masks it).
    max_tile_rows = max(min_rows,
                        (_TARGET_BLOCK_BYTES // (_LANES * itemsize)) // min_rows * min_rows)
    tile_rows = min((rows // min_rows) * min_rows, max_tile_rows)
    num_tiles = pl.cdiv(rows, tile_rows)

    x3 = x.reshape(b, rows, _LANES)     # zero-copy lane-dense view
    keep_i32 = keep.astype(jnp.int32)

    def x_index_map(i, t, keep_ref, scale_ref):
        # Dropped samples: block index is constant across t, so Pallas does not
        # re-DMA x for them; the kernel's scale == 0 makes the output correct.
        return (i, t * keep_ref[i], 0)

    def o_index_map(i, t, keep_ref, scale_ref):
        return (i, t, 0)

    out = pl.pallas_call(
        _drop_path_kernel,
        out_shape=jax.ShapeDtypeStruct((b, rows, _LANES), x.dtype),
        grid_spec=pltpu.PrefetchScalarGridSpec(
            num_scalar_prefetch=2,      # keep_i32, scale -> SMEM
            grid=(b, num_tiles),
            in_specs=[pl.BlockSpec((1, tile_rows, _LANES), x_index_map)],
            out_specs=pl.BlockSpec((1, tile_rows, _LANES), o_index_map),
        ),
        compiler_params=pltpu.CompilerParams(
            dimension_semantics=("parallel", "parallel"),
        ),
        cost_estimate=pl.CostEstimate(
            flops=x.size,
            transcendentals=0,
            bytes_accessed=2 * x.size * itemsize,
        ),
    )(keep_i32, scale, x3)

    return out.reshape(x.shape)


class DropPath:
    """JAX/Pallas counterpart of the PyTorch DropPath module."""

    def __init__(self, drop_prob: float = 0.0):
        self.drop_prob = drop_prob or 0.0
        self.training = True

    def __call__(self, x: jax.Array, key: jax.Array) -> jax.Array:
        return drop_path(x, key, self.drop_prob, self.training)


def _reference(x, key, drop_prob):
    keep_prob = 1.0 - drop_prob
    u = jax.random.uniform(key, (x.shape[0],), dtype=jnp.float32)
    scale = jnp.where(u < keep_prob, jnp.float32(1.0 / keep_prob), jnp.float32(0.0))
    return x * scale.astype(x.dtype).reshape((-1,) + (1,) * (x.ndim - 1))


if __name__ == "__main__":
    root = jax.random.PRNGKey(0)
    k_x, k_mask, k_x2, k_x3 = jax.random.split(root, 4)

    module = DropPath(drop_prob=0.3)
    module.training = True

    # 1) Kernel path, f32, lane-dense (chw % 128 == 0, above the size threshold).
    x = jax.random.normal(k_x, (2, 8, 64, 128), dtype=jnp.float32)
    y = jax.block_until_ready(module(x, k_mask))
    assert jnp.allclose(y, _reference(x, k_mask, module.drop_prob), atol=1e-6), "f32 kernel mismatch"

    # 2) Kernel path, bf16 (native-dtype multiply, 16-row sublane packing).
    xb = x.astype(jnp.bfloat16)
    yb = jax.block_until_ready(module(xb, k_mask))
    ref_b = _reference(xb, k_mask, module.drop_prob)
    assert jnp.allclose(yb.astype(jnp.float32), ref_b.astype(jnp.float32), atol=1e-2), "bf16 kernel mismatch"

    # 3) Kernel path with a partial edge tile (rows = 513, tile_rows = 512).
    x3 = jax.random.normal(k_x3, (2, 3, 171, 128), dtype=jnp.float32)
    y3 = jax.block_until_ready(module(x3, k_mask))
    assert jnp.allclose(y3, _reference(x3, k_mask, module.drop_prob), atol=1e-6), "partial-tile mismatch"

    # 4) Small / ragged shapes take the XLA fallback path.
    xs = jax.random.normal(k_x2, (2, 4, 16, 16), dtype=jnp.float32)
    ys = jax.block_until_ready(module(xs, k_mask))
    assert jnp.allclose(ys, _reference(xs, k_mask, module.drop_prob), atol=1e-6), "small fallback mismatch"

    xr = jax.random.normal(k_x2, (2, 3, 7, 5), dtype=jnp.float32)
    yr = jax.block_until_ready(module(xr, k_mask))
    assert jnp.allclose(yr, _reference(xr, k_mask, module.drop_prob), atol=1e-6), "ragged fallback mismatch"

    # 5) Eval mode / drop_prob == 0 are identity paths.
    module.training = False
    y_eval = jax.block_until_ready(module(x, k_mask))
    assert jnp.array_equal(y_eval, x), "eval mode should be identity"
    module.training = True

    print("KERNEL_OK")
</pallas_src>

<mosaic_0001>
module attributes {stable_mosaic.version = 11 : i64} {
  func.func @_drop_path_kernel(%arg0: i32, %arg1: i32, %arg2: memref<2xi32, #tpu.memory_space<smem>>, %arg3: memref<2xf32, #tpu.memory_space<smem>>, %arg4: memref<1x512x128xf32, #tpu.memory_space<vmem>>, %arg5: memref<1x512x128xf32, #tpu.memory_space<vmem>>) attributes {dimension_semantics = [#tpu.dimension_semantics<parallel>, #tpu.dimension_semantics<parallel>], iteration_bounds = array<i64: 2, 1>, scalar_prefetch = 2 : i64, scratch_operands = 0 : i64, tpu.core_type = #tpu.core_type<tc>, window_params = [{transform_indices = @transform_0, window_bounds = array<i64: 1, 512, 128>}, {transform_indices = @transform_1, window_bounds = array<i64: 1, 512, 128>}]} {
    %0 = arith.index_cast %arg0 : i32 to index
    %1 = memref.load %arg3[%0] : memref<2xf32, #tpu.memory_space<smem>>
    %c0 = arith.constant 0 : index
    %c0_0 = arith.constant 0 : index
    %c0_1 = arith.constant 0 : index
    %2 = vector.load %arg4[%c0, %c0_0, %c0_1] : memref<1x512x128xf32, #tpu.memory_space<vmem>>, vector<1x512x128xf32>
    %3 = vector.broadcast %1 : f32 to vector<1x512x128xf32>
    %4 = arith.mulf %2, %3 : vector<1x512x128xf32>
    %c0_2 = arith.constant 0 : index
    %c0_3 = arith.constant 0 : index
    %c0_4 = arith.constant 0 : index
    %5 = vector.load %arg5[%c0_2, %c0_3, %c0_4] : memref<1x512x128xf32, #tpu.memory_space<vmem>>, vector<1x512x128xf32>
    tpu.vector_store %arg5[%c0_2, %c0_3, %c0_4], %4 {strides = array<i32>} : memref<1x512x128xf32, #tpu.memory_space<vmem>>, vector<1x512x128xf32>,
    return
  }
  func.func @transform_0(%arg0: i32, %arg1: i32, %arg2: memref<2xi32, #tpu.memory_space<smem>>, %arg3: memref<2xf32, #tpu.memory_space<smem>>) -> (i32, i32, i32) {
    %0 = arith.index_cast %arg0 : i32 to index
    %1 = memref.load %arg2[%0] : memref<2xi32, #tpu.memory_space<smem>>
    %2 = arith.muli %arg1, %1 : i32
    %c0_i32 = arith.constant 0 : i32
    %c0_i32_0 = arith.constant 0 : i32
    return %arg0, %2, %c0_i32 : i32, i32, i32
  }
  func.func @transform_1(%arg0: i32, %arg1: i32, %arg2: memref<2xi32, #tpu.memory_space<smem>>, %arg3: memref<2xf32, #tpu.memory_space<smem>>) -> (i32, i32, i32) {
    %c0_i32 = arith.constant 0 : i32
    %c0_i32_0 = arith.constant 0 : i32
    return %arg0, %arg1, %c0_i32 : i32, i32, i32
  }
}

</mosaic_0001>

<bundles_post_ra>
// kernel: tpu_custom_call.1
= control target key start
LH: loop header
LB: loop body
LE: loop exit
PB: predicated region body
PF: predicated region fallthrough
CT: control target
= control target key end

     0   :  { %s1111_s0 = inlined_call_operand.hbm [shape: s32[2], index: 0, kind: input, shape index: {}]   ;;  %s1112_s2 = inlined_call_operand.hbm [shape: f32[2,512,128], index: 2, kind: input, shape index: {}]   ;;  %s1113_s3 = inlined_call_operand.hbm [shape: f32[2,512,128], index: 3, kind: output, shape index: {}]   ;;  %s1114_s1 = inlined_call_operand.vmem [shape: f32[2], index: 1, kind: input, shape index: {}]  }
   0x1   :  { %s555_s14 = scalar_lea.hbm %s1111_s0, 16 }
   0x2   :  { %p556_p0 = scmp.ne.s32.totalorder %s1111_s0, %s555_s14  ;;  %p559_p1 = scmp.lt.u32.totalorder %s555_s14, %s1111_s0 }
   0x4   :  { %p561_p2 = pnand %p559_p1, %p556_p0 }
   0x6   :  { %564 = shalt.err (!%p561_p2)  }
   0x7   :  { %s693_s19 = smov [#allocation3]   ;;  %s10_s24 = sshll.u32 %s1114_s1, 4  ;;  %s11_s24 = int_to_ptr.vmem [resolvable:$true] %s10_s24 }
   0x8   :  { %9 = dma.hbm_to_smem %s1111_s0, 16, %s693_s19, [#allocation2] }
   0x9   :  { %s565_s25 = scalar_lea.vmem %s11_s24, 16  ;;  %p570_p4 = scmp.lt.s32.totalorder %s11_s24, %s11_s24 }
   0xa   :  { %p566_p3 = scmp.ne.s32.totalorder %s11_s24, %s565_s25  ;;  %p571_p5 = scmp.lt.s32.totalorder %s565_s25, %s565_s25 }
   0xc   :  { %p572_p6 = por %p571_p5, %p570_p4 }
   0xe   :  { %p573_p7 = pnand %p572_p6, %p566_p3 }
  0x10   :  { %576 = shalt.err (!%p573_p7)  }
  0x11   :  { %s694_s26 = smov [#allocation4]  }
  0x12   :  { %13 = dma.vmem_to_smem %s11_s24, 16, %s694_s26, [#allocation2] }
  0x13   :  { %659 = dma.done.wait [#allocation2], 32 }
  0x14   :  { %660 = vsyncadd [#allocation2], 4294967264 }
  0x15   :  { %15 = sfence }
  0x16   :  { %16 = vsyncpa [#allocation6], 0 }
  0x17   :  { %18 = vsyncpa [#allocation6 + $0x1], 0 }
  0x18   :  { %19 = vsyncpa [#allocation7], 0 }
  0x19   :  { %21 = vsyncpa [#allocation7 + $0x1], 0  ;;  %s736_s0 = smov 0   ;;  %s738_s1 = smov 0  }
  0x1a   :  { %s740_s27 = smov 0   ;;  %s742_s28 = smov 0  }
  0x1b   :  { %s744_s29 = smov 0   ;;  %s746_s30 = smov 0  }
  0x1c LB: > { %s470_s4 = sadd.s32 4294967295, %s691_s30   ;;  %s471_s5 = sadd.s32 4294967294, %s691_s30   ;;  %s691_s30 = sphi %s746_s30, %s27_s30   ;;  %s687_s29 = sphi %s744_s29, %s1129_s29   ;;  %s683_s28 = sphi %s742_s28, %s1128_s28   ;;  %s679_s27 = sphi %s740_s27, %s1127_s27   ;;  %s675_s1 = sphi %s738_s1, %s1126_s1   ;;  %s671_s0 = sphi %s736_s0, %s1125_s0  }
  0x1d   : > { %s39_s6 = sadd.s32 1, %s687_s29  ;;  %s52_s7 = sadd.s32 1, %s679_s27 }
  0x1e   : > { %p41_p8 = scmp.ge.s32.totalorder %s39_s6, 2  ;;  %p59_p9 = scmp.ne.s32.totalorder %s679_s27, %s675_s1 }
  0x1f   : > { %p60_p10 = scmp.eq.s32.totalorder %s691_s30, 0  ;;  %p65_p11 = scmp.ne.s32.totalorder %s675_s1, %s671_s0 }
  0x20   : > { %s1131_s6 = smov (%p41_p8, %s39_s6), 0  ;;  %p66_p13 = scmp.eq.s32.totalorder %s470_s4, 0 }
  0x21   : > { %p777_p12 = por %p60_p10, %p59_p9  ;;  %s47_s9 = ssub.s32 %s687_s29, %s1131_s6 }
  0x22   : > { %p91_p0 = scmp.eq.s32.totalorder %s470_s4, 1  ;;  %p50_p1 = scmp.eq.s32.totalorder %s47_s9, 0 }
  0x23   : > { %p783_p2 = por %p66_p13, %p65_p11  ;;  %p97_p4 = scmp.eq.s32.totalorder %s471_s5, 1 }
  0x24   : > { %p787_p3 = por %p91_p0, %p59_p9  ;;  %p499_p7 = scmp.lt.s32.totalorder %s691_s30, 2 }
  0x25   : > { %s792_s12 = scalar_select %p50_p1, %s679_s27, %s52_s7  }
  0x26   : > { %s1118_s11 = scalar_select %p787_p3, 1, 0 }
  0x27   : > { %p794_p5 = por %p97_p4, %p65_p11  ;;  %s117_s14 = sand.u32 1, %s679_s27  }
  0x28   : > { %s474_s15 = sshll.u32 %s117_s14, 9  ;;  %s485_s16 = sshll.u32 %s687_s29, 13 }
  0x29   : > { %s1119_s13 = scalar_select %p794_p5, 1, 0 }
  0x2a   : > { %s805_s19 = scalar_lea.hbm %s1112_s2, %s485_s16  ;;  %s121_s20 = scalar_lea.vmem [#allocation5], %s474_s15 }
  0x2b   : > { %s132_s21 = sshll.u32 %s121_s20, 4  ;;  %p811_p8 = pnand %p499_p7, %p777_p12  ;;  %s807_s21 = int_to_ptr.vmem [resolvable:$true] %s132_s21 }
  0x2c   : > { %s816_s23 = scalar_lea.sflag [#allocation6], %s117_s14  ;;  %s577_s24 = scalar_lea.hbm %s805_s19, 8192 }
  0x2d   : > { %p578_p10 = scmp.ne.s32.totalorder %s805_s19, %s577_s24  ;;  %p579_p11 = pneg %p811_p8 }
  0x2e   : > { %s582_s4 = scalar_lea.hbm %s1112_s2, 16384  ;;  %p583_p12 = scmp.lt.u32.totalorder %s805_s19, %s1112_s2 }
  0x2f   : > { %p580_p13 = pnand %p579_p11, %p578_p10  ;;  %p584_p1 = scmp.lt.u32.totalorder %s582_s4, %s577_s24 }
  0x30   : > { %p586_p7 = scmp.lt.u32.totalorder %s577_s24, %s805_s19 }
  0x31   : > { %p581_p0 = pneg %p580_p13  ;;  %p585_p4 = por %p584_p1, %p583_p12 }
  0x33   : > { %p587_p6 = por %p586_p7, %p585_p4 }
  0x35   : > { %p588_p9 = pnand %p587_p6, %p581_p0 }
  0x37   : > { %591 = shalt.err (!%p588_p9)
}
  0x38   : > { %s592_s8 = scalar_lea.vmem %s807_s21, 8192  ;;  %s695_s9 = smov [#allocation5]  }
  0x39   : > { %p593_p10 = scmp.ne.s32.totalorder %s807_s21, %s592_s8  ;;  %s597_s14 = sshll.u32 %s695_s9, 4  ;;  %s598_s14 = int_to_ptr.vmem [resolvable:$false] %s597_s14 }
  0x3a   : > { %s599_s15 = scalar_lea.vmem %s598_s14, 16384  ;;  %p600_p3 = scmp.lt.s32.totalorder %s807_s21, %s598_s14 }
  0x3b   : > { %p595_p13 = pnand %p593_p10, %p579_p11  ;;  %p601_p12 = scmp.lt.s32.totalorder %s599_s15, %s592_s8 }
  0x3d   : > { %p596_p5 = pneg %p595_p13  ;;  %p602_p1 = por %p601_p12, %p600_p3 }
  0x3f   : > { %p603_p4 = pnand %p602_p1, %p596_p5 }
  0x41   : > { %606 = shalt.err (!%p603_p4)
}
  0x42   : > { %s696_s16 = smov 128   ;;  %s697_s17 = smov 8  }
  0x43   : > { %494 = dma.hbm_to_vmem [thread:$0]  (!%p811_p8), %s805_s19, 8192, %s807_s21, %s816_s23, %s696_s16, %s696_s16, %s697_s17  }
  0x44   : > { %p140_p6 = scmp.lt.s32.totalorder %s691_s30, 3  ;;  %p1121_p9 = scmp.ge.s32.totalorder %s691_s30, 1 }
  0x46   : > { %p141_p11 = pnand %p1121_p9, %p140_p6 }
  0x47   : > { %s848_s18 = sand.u32 (!%p141_p11), 1, %s675_s1  }
  0x48   : > { %144 = sbr.rel (%p141_p11) target bundleno = 135 (0x87), region = 24  ;;  %s478_s20 = sshll.u32 (!%p141_p11), %s848_s18, 9 }
  0x49   : > { %s147_s24 = scalar_lea.sflag (!%p141_p11), [#allocation6], %s848_s18  ;;  %s852_s25 = scalar_lea.vmem (!%p141_p11), [#allocation5], %s478_s20 }
  0x4f   : > { %662 = dma.done.wait (%p783_p2), %s147_s24, 8192  }
  0x50   : > { %664 = vsyncadd (%p783_p2), %s147_s24, 4294959104  ;;  %s173_s19 = sld [smem:[#allocation4 + %s683_s28]]  ;;  %v174_v0 = vld [vmem:[%s852_s25] sm:$0xff]  ;;  %v175_v2 = vld [vmem:[%s852_s25 + $0x8] sm:$0xff]  ;;  %s876_s10 = scalar_lea.vmem [#allocation8], %s478_s20 }
  0x51   : > { %v176_v3 = vld [vmem:[%s852_s25 + $0x10] sm:$0xff]  ;;  %v177_v7 = vld [vmem:[%s852_s25 + $0x18] sm:$0xff]  ;;  %v178_v8 = vld [vmem:[%s852_s25 + $0x20] sm:$0xff]  ;;  %s486_s21 = sshll.u32 %s683_s28, 13  ;;  %s383_s22 = sshll.u32 %s876_s10, 4  ;;  %s1054_s22 = int_to_ptr.vmem [resolvable:$true] %s383_s22 }
  0x52   : > { %v179_v9 = vld [vmem:[%s852_s25 + $0x28] sm:$0xff]  ;;  %v180_v13 = vld [vmem:[%s852_s25 + $0x30] sm:$0xff]  ;;  %v181_v14 = vld [vmem:[%s852_s25 + $0x38] sm:$0xff]  ;;  %s1052_s26 = scalar_lea.hbm %s1113_s3, %s486_s21  ;;  %s368_s4 = scalar_lea.sflag [#allocation7], %s848_s18 }
  0x53   : > { %v182_v15 = vld [vmem:[%s852_s25 + $0x40] sm:$0xff]  ;;  %v183_v19 = vld [vmem:[%s852_s25 + $0x48] sm:$0xff]  ;;  %v184_v20 = vld [vmem:[%s852_s25 + $0x50] sm:$0xff]  ;;  %s607_s5 = scalar_lea.vmem %s1054_s22, 8192  ;;  %p1122_p3 = scmp.ne.s32.totalorder %s1118_s11, 0 }
  0x54   : > { %v185_v21 = vld [vmem:[%s852_s25 + $0x58] sm:$0xff]  ;;  %v186_v25 = vld [vmem:[%s852_s25 + $0x60] sm:$0xff]  ;;  %v187_v26 = vld [vmem:[%s852_s25 + $0x68] sm:$0xff]  ;;  %p608_p2 = scmp.ne.s32.totalorder %s1054_s22, %s607_s5  ;;  %s698_s7 = smov [#allocation8]  }
  0x55   : > { %v188_v27 = vld [vmem:[%s852_s25 + $0x70] sm:$0xff]  ;;  %v189_v31 = vld [vmem:[%s852_s25 + $0x78] sm:$0xff]  ;;  %v190_v32 = vld [vmem:[%s852_s25 + $0x80] sm:$0xff]  ;;  %s611_s8 = sshll.u32 %s698_s7, 4  ;;  %s612_s8 = int_to_ptr.vmem [resolvable:$false] %s611_s8 }
  0x56   : > { %v860_v1 = vstv %s173_s19  ;;  %v191_v33 = vld [vmem:[%s852_s25 + $0x88] sm:$0xff]  ;;  %v192_v37 = vld [vmem:[%s852_s25 + $0x90] sm:$0xff]  ;;  %v193_v38 = vld [vmem:[%s852_s25 + $0x98] sm:$0xff]  ;;  %p609_p5 = pnand %p608_p2, %p1122_p3  ;;  %s613_s9 = scalar_lea.vmem %s612_s8, 16384 }
  0x57   : > { %v239_v4 = vmul.f32 %v860_v1, %v174_v0  ;;  %v240_v5 = vmul.f32 %v860_v1, %v175_v2  ;;  %v241_v6 = vmul.f32 %v860_v1, %v176_v3  ;;  %v242_v10 = vmul.f32 %v860_v1, %v177_v7  ;;  %v194_v39 = vld [vmem:[%s852_s25 + $0xa0] sm:$0xff]  ;;  %v195_v43 = vld [vmem:[%s852_s25 + $0xa8] sm:$0xff]  ;;  %v196_v44 = vld [vmem:[%s852_s25 + $0xb0] sm:$0xff]  ;;  %p614_p0 = scmp.lt.s32.totalorder %s1054_s22, %s612_s8  ;;  %p615_p7 = scmp.lt.s32.totalorder %s613_s9, %s607_s5 }
  0x58   : > { %v243_v11 = vmul.f32 %v860_v1, %v178_v8  ;;  %v244_v12 = vmul.f32 %v860_v1, %v179_v9  ;;  %v245_v16 = vmul.f32 %v860_v1, %v180_v13  ;;  %v246_v17 = vmul.f32 %v860_v1, %v181_v14  ;;  %v197_v45 = vld [vmem:[%s852_s25 + $0xb8] sm:$0xff]  ;;  %v198_v49 = vld [vmem:[%s852_s25 + $0xc0] sm:$0xff]  ;;  %v199_v50 = vld [vmem:[%s852_s25 + $0xc8] sm:$0xff]  ;;  %p610_p8 = pneg %p609_p5 }
  0x59   : > { %303 = vst [vmem:[%s876_s10] sm:$0xff] %v239_v4  ;;  %304 = vst [vmem:[%s876_s10 + $0x8] sm:$0xff] %v240_v5  ;;  %v247_v18 = vmul.f32 %v860_v1, %v182_v15  ;;  %v248_v22 = vmul.f32 %v860_v1, %v183_v19  ;;  %v249_v23 = vmul.f32 %v860_v1, %v184_v20  ;;  %v200_v51 = vld [vmem:[%s852_s25 + $0xd0] sm:$0xff]  ;;  %v201_v55 = vld [vmem:[%s852_s25 + $0xd8] sm:$0xff]  ;;  %p616_p10 = por %p615_p7, %p614_p0 }
  0x5a   : > { %305 = vst [vmem:[%s876_s10 + $0x10] sm:$0xff] %v241_v6  ;;  %306 = vst [vmem:[%s876_s10 + $0x18] sm:$0xff] %v242_v10  ;;  %v250_v24 = vmul.f32 %v860_v1, %v185_v21  ;;  %v251_v28 = vmul.f32 %v860_v1, %v186_v25  ;;  %v252_v29 = vmul.f32 %v860_v1, %v187_v26  ;;  %v202_v56 = vld [vmem:[%s852_s25 + $0xe0] sm:$0xff]  ;;  %v203_v57 = vld [vmem:[%s852_s25 + $0xe8] sm:$0xff] }
  0x5b   : > { %307 = vst [vmem:[%s876_s10 + $0x20] sm:$0xff] %v243_v11  ;;  %308 = vst [vmem:[%s876_s10 + $0x28] sm:$0xff] %v244_v12  ;;  %v253_v30 = vmul.f32 %v860_v1, %v188_v27  ;;  %v254_v34 = vmul.f32 %v860_v1, %v189_v31  ;;  %v255_v35 = vmul.f32 %v860_v1, %v190_v32  ;;  %v204_v61 = vld [vmem:[%s852_s25 + $0xf0] sm:$0xff]  ;;  %v205_v62 = vld [vmem:[%s852_s25 + $0xf8] sm:$0xff]  ;;  %p617_p13 = pnand %p616_p10, %p610_p8 }
  0x5c   : > { %309 = vst [vmem:[%s876_s10 + $0x30] sm:$0xff] %v245_v16  ;;  %310 = vst [vmem:[%s876_s10 + $0x38] sm:$0xff] %v246_v17  ;;  %v256_v36 = vmul.f32 %v860_v1, %v191_v33  ;;  %v257_v40 = vmul.f32 %v860_v1, %v192_v37  ;;  %v258_v41 = vmul.f32 %v860_v1, %v193_v38  ;;  %v206_v63 = vld [vmem:[%s852_s25 + $0x100] sm:$0xff]  ;;  %v207_v4 = vld [vmem:[%s852_s25 + $0x108] sm:$0xff] }
  0x5d   : > { %311 = vst [vmem:[%s876_s10 + $0x40] sm:$0xff] %v247_v18  ;;  %312 = vst [vmem:[%s876_s10 + $0x48] sm:$0xff] %v248_v22  ;;  %v259_v42 = vmul.f32 %v860_v1, %v194_v39  ;;  %v260_v46 = vmul.f32 %v860_v1, %v195_v43  ;;  %v261_v47 = vmul.f32 %v860_v1, %v196_v44  ;;  %v208_v5 = vld [vmem:[%s852_s25 + $0x110] sm:$0xff]  ;;  %v209_v6 = vld [vmem:[%s852_s25 + $0x118] sm:$0xff] }
  0x5e   : > { %313 = vst [vmem:[%s876_s10 + $0x50] sm:$0xff] %v249_v23  ;;  %314 = vst [vmem:[%s876_s10 + $0x58] sm:$0xff] %v250_v24  ;;  %v262_v48 = vmul.f32 %v860_v1, %v197_v45  ;;  %v263_v52 = vmul.f32 %v860_v1, %v198_v49  ;;  %v264_v53 = vmul.f32 %v860_v1, %v199_v50  ;;  %v210_v10 = vld [vmem:[%s852_s25 + $0x120] sm:$0xff]  ;;  %v211_v11 = vld [vmem:[%s852_s25 + $0x128] sm:$0xff] }
  0x5f   : > { %315 = vst [vmem:[%s876_s10 + $0x60] sm:$0xff] %v251_v28  ;;  %316 = vst [vmem:[%s876_s10 + $0x68] sm:$0xff] %v252_v29  ;;  %v265_v54 = vmul.f32 %v860_v1, %v200_v51  ;;  %v266_v58 = vmul.f32 %v860_v1, %v201_v55  ;;  %v267_v59 = vmul.f32 %v860_v1, %v202_v56  ;;  %v212_v12 = vld [vmem:[%s852_s25 + $0x130] sm:$0xff]  ;;  %v213_v16 = vld [vmem:[%s852_s25 + $0x138] sm:$0xff] }
  0x60   : > { %317 = vst [vmem:[%s876_s10 + $0x70] sm:$0xff] %v253_v30  ;;  %318 = vst [vmem:[%s876_s10 + $0x78] sm:$0xff] %v254_v34  ;;  %v268_v60 = vmul.f32 %v860_v1, %v203_v57  ;;  %v269_v0 = vmul.f32 %v860_v1, %v204_v61  ;;  %v270_v2 = vmul.f32 %v860_v1, %v205_v62  ;;  %v214_v17 = vld [vmem:[%s852_s25 + $0x140] sm:$0xff]  ;;  %v215_v18 = vld [vmem:[%s852_s25 + $0x148] sm:$0xff] }
  0x61   : > { %319 = vst [vmem:[%s876_s10 + $0x80] sm:$0xff] %v255_v35  ;;  %320 = vst [vmem:[%s876_s10 + $0x88] sm:$0xff] %v256_v36  ;;  %v271_v3 = vmul.f32 %v860_v1, %v206_v63  ;;  %v272_v7 = vmul.f32 %v860_v1, %v207_v4  ;;  %v273_v8 = vmul.f32 %v860_v1, %v208_v5  ;;  %v216_v22 = vld [vmem:[%s852_s25 + $0x150] sm:$0xff]  ;;  %v217_v23 = vld [vmem:[%s852_s25 + $0x158] sm:$0xff] }
  0x62   : > { %321 = vst [vmem:[%s876_s10 + $0x90] sm:$0xff] %v257_v40  ;;  %322 = vst [vmem:[%s876_s10 + $0x98] sm:$0xff] %v258_v41  ;;  %v274_v9 = vmul.f32 %v860_v1, %v209_v6  ;;  %v275_v13 = vmul.f32 %v860_v1, %v210_v10  ;;  %v276_v14 = vmul.f32 %v860_v1, %v211_v11  ;;  %v218_v24 = vld [vmem:[%s852_s25 + $0x160] sm:$0xff]  ;;  %v219_v28 = vld [vmem:[%s852_s25 + $0x168] sm:$0xff] }
  0x63   : > { %323 = vst [vmem:[%s876_s10 + $0xa0] sm:$0xff] %v259_v42  ;;  %324 = vst [vmem:[%s876_s10 + $0xa8] sm:$0xff] %v260_v46  ;;  %v277_v15 = vmul.f32 %v860_v1, %v212_v12  ;;  %v278_v19 = vmul.f32 %v860_v1, %v213_v16  ;;  %v279_v20 = vmul.f32 %v860_v1, %v214_v17  ;;  %v220_v29 = vld [vmem:[%s852_s25 + $0x170] sm:$0xff]  ;;  %v221_v30 = vld [vmem:[%s852_s25 + $0x178] sm:$0xff] }
  0x64   : > { %325 = vst [vmem:[%s876_s10 + $0xb0] sm:$0xff] %v261_v47  ;;  %326 = vst [vmem:[%s876_s10 + $0xb8] sm:$0xff] %v262_v48  ;;  %v280_v21 = vmul.f32 %v860_v1, %v215_v18  ;;  %v281_v25 = vmul.f32 %v860_v1, %v216_v22  ;;  %v282_v26 = vmul.f32 %v860_v1, %v217_v23  ;;  %v222_v34 = vld [vmem:[%s852_s25 + $0x180] sm:$0xff]  ;;  %v223_v35 = vld [vmem:[%s852_s25 + $0x188] sm:$0xff] }
  0x65   : > { %327 = vst [vmem:[%s876_s10 + $0xc0] sm:$0xff] %v263_v52  ;;  %328 = vst [vmem:[%s876_s10 + $0xc8] sm:$0xff] %v264_v53  ;;  %v283_v27 = vmul.f32 %v860_v1, %v218_v24  ;;  %v284_v31 = vmul.f32 %v860_v1, %v219_v28  ;;  %v285_v32 = vmul.f32 %v860_v1, %v220_v29  ;;  %v224_v36 = vld [vmem:[%s852_s25 + $0x190] sm:$0xff]  ;;  %v225_v40 = vld [vmem:[%s852_s25 + $0x198] sm:$0xff] }
  0x66   : > { %329 = vst [vmem:[%s876_s10 + $0xd0] sm:$0xff] %v265_v54  ;;  %330 = vst [vmem:[%s876_s10 + $0xd8] sm:$0xff] %v266_v58  ;;  %v286_v33 = vmul.f32 %v860_v1, %v221_v30  ;;  %v287_v37 = vmul.f32 %v860_v1, %v222_v34  ;;  %v288_v38 = vmul.f32 %v860_v1, %v223_v35  ;;  %v226_v41 = vld [vmem:[%s852_s25 + $0x1a0] sm:$0xff]  ;;  %v227_v42 = vld [vmem:[%s852_s25 + $0x1a8] sm:$0xff] }
  0x67   : > { %331 = vst [vmem:[%s876_s10 + $0xe0] sm:$0xff] %v267_v59  ;;  %332 = vst [vmem:[%s876_s10 + $0xe8] sm:$0xff] %v268_v60  ;;  %v289_v39 = vmul.f32 %v860_v1, %v224_v36  ;;  %v290_v43 = vmul.f32 %v860_v1, %v225_v40  ;;  %v291_v44 = vmul.f32 %v860_v1, %v226_v41  ;;  %v228_v46 = vld [vmem:[%s852_s25 + $0x1b0] sm:$0xff]  ;;  %v229_v47 = vld [vmem:[%s852_s25 + $0x1b8] sm:$0xff] }
  0x68   : > { %333 = vst [vmem:[%s876_s10 + $0xf0] sm:$0xff] %v269_v0  ;;  %334 = vst [vmem:[%s876_s10 + $0xf8] sm:$0xff] %v270_v2  ;;  %v292_v45 = vmul.f32 %v860_v1, %v227_v42  ;;  %v230_v48 = vld [vmem:[%s852_s25 + $0x1c0] sm:$0xff]  ;;  %v293_v49 = vmul.f32 %v860_v1, %v228_v46  ;;  %v294_v50 = vmul.f32 %v860_v1, %v229_v47  ;;  %v231_v52 = vld [vmem:[%s852_s25 + $0x1c8] sm:$0xff] }
  0x69   : > { %335 = vst [vmem:[%s876_s10 + $0x100] sm:$0xff] %v271_v3  ;;  %336 = vst [vmem:[%s876_s10 + $0x108] sm:$0xff] %v272_v7  ;;  %v295_v51 = vmul.f32 %v860_v1, %v230_v48  ;;  %v232_v53 = vld [vmem:[%s852_s25 + $0x1d0] sm:$0xff]  ;;  %v233_v54 = vld [vmem:[%s852_s25 + $0x1d8] sm:$0xff]  ;;  %v296_v55 = vmul.f32 %v860_v1, %v231_v52 }
  0x6a   : > { %337 = vst [vmem:[%s876_s10 + $0x110] sm:$0xff] %v273_v8  ;;  %338 = vst [vmem:[%s876_s10 + $0x118] sm:$0xff] %v274_v9  ;;  %v297_v56 = vmul.f32 %v860_v1, %v232_v53  ;;  %v298_v57 = vmul.f32 %v860_v1, %v233_v54  ;;  %v234_v58 = vld [vmem:[%s852_s25 + $0x1e0] sm:$0xff]  ;;  %v235_v59 = vld [vmem:[%s852_s25 + $0x1e8] sm:$0xff] }
  0x6b   : > { %339 = vst [vmem:[%s876_s10 + $0x120] sm:$0xff] %v275_v13  ;;  %340 = vst [vmem:[%s876_s10 + $0x128] sm:$0xff] %v276_v14  ;;  %v236_v60 = vld [vmem:[%s852_s25 + $0x1f0] sm:$0xff]  ;;  %v299_v61 = vmul.f32 %v860_v1, %v234_v58  ;;  %v300_v62 = vmul.f32 %v860_v1, %v235_v59  ;;  %v237_v0 = vld [vmem:[%s852_s25 + $0x1f8] sm:$0xff] }
  0x6c   : > { %341 = vst [vmem:[%s876_s10 + $0x130] sm:$0xff] %v277_v15  ;;  %342 = vst [vmem:[%s876_s10 + $0x138] sm:$0xff] %v278_v19  ;;  %v301_v63 = vmul.f32 %v860_v1, %v236_v60  ;;  %v302_v2 = vmul.f32 %v860_v1, %v237_v0 }
  0x6d   : > { %343 = vst [vmem:[%s876_s10 + $0x140] sm:$0xff] %v279_v20  ;;  %344 = vst [vmem:[%s876_s10 + $0x148] sm:$0xff] %v280_v21 }
  0x6e   : > { %345 = vst [vmem:[%s876_s10 + $0x150] sm:$0xff] %v281_v25  ;;  %346 = vst [vmem:[%s876_s10 + $0x158] sm:$0xff] %v282_v26 }
  0x6f   : > { %347 = vst [vmem:[%s876_s10 + $0x160] sm:$0xff] %v283_v27  ;;  %348 = vst [vmem:[%s876_s10 + $0x168] sm:$0xff] %v284_v31 }
  0x70   : > { %349 = vst [vmem:[%s876_s10 + $0x170] sm:$0xff] %v285_v32  ;;  %350 = vst [vmem:[%s876_s10 + $0x178] sm:$0xff] %v286_v33 }
  0x71   : > { %351 = vst [vmem:[%s876_s10 + $0x180] sm:$0xff] %v287_v37  ;;  %352 = vst [vmem:[%s876_s10 + $0x188] sm:$0xff] %v288_v38 }
  0x72   : > { %353 = vst [vmem:[%s876_s10 + $0x190] sm:$0xff] %v289_v39  ;;  %354 = vst [vmem:[%s876_s10 + $0x198] sm:$0xff] %v290_v43 }
  0x73   : > { %355 = vst [vmem:[%s876_s10 + $0x1a0] sm:$0xff] %v291_v44  ;;  %356 = vst [vmem:[%s876_s10 + $0x1a8] sm:$0xff] %v292_v45 }
  0x74   : > { %357 = vst [vmem:[%s876_s10 + $0x1b0] sm:$0xff] %v293_v49  ;;  %358 = vst [vmem:[%s876_s10 + $0x1b8] sm:$0xff] %v294_v50 }
  0x75   : > { %359 = vst [vmem:[%s876_s10 + $0x1c0] sm:$0xff] %v295_v51  ;;  %360 = vst [vmem:[%s876_s10 + $0x1c8] sm:$0xff] %v296_v55 }
  0x76   : > { %361 = vst [vmem:[%s876_s10 + $0x1d0] sm:$0xff] %v297_v56  ;;  %362 = vst [vmem:[%s876_s10 + $0x1d8] sm:$0xff] %v298_v57 }
  0x77   : > { %363 = vst [vmem:[%s876_s10 + $0x1e0] sm:$0xff] %v299_v61  ;;  %364 = vst [vmem:[%s876_s10 + $0x1e8] sm:$0xff] %v300_v62 }
  0x78   : > { %365 = vst [vmem:[%s876_s10 + $0x1f0] sm:$0xff] %v301_v63  ;;  %366 = vst [vmem:[%s876_s10 + $0x1f8] sm:$0xff] %v302_v2 }
  0x79   : > { %620 = shalt.err (!%p617_p13)
}
  0x7a   : > { %s621_s14 = scalar_lea.hbm %s1052_s26, 8192  ;;  %s625_s17 = scalar_lea.hbm %s1113_s3, 16384 }
  0x7b   : > { %p622_p12 = scmp.ne.s32.totalorder %s1052_s26, %s621_s14  ;;  %p626_p6 = scmp.lt.u32.totalorder %s1052_s26, %s1113_s3 }
  0x7c   : > { %p627_p9 = scmp.lt.u32.totalorder %s625_s17, %s621_s14  ;;  %p629_p2 = scmp.lt.u32.totalorder %s621_s14, %s1052_s26 }
  0x7d   : > { %p623_p1 = pnand %p622_p12, %p1122_p3 }
  0x7e   : > { %p628_p11 = por %p627_p9, %p626_p6 }
  0x7f   : > { %p624_p4 = pneg %p623_p1 }
  0x80   : > { %p630_p5 = por %p629_p2, %p628_p11 }
  0x82   : > { %p631_p8 = pnand %p630_p5, %p624_p4 }
  0x84   : > { %634 = shalt.err (!%p631_p8)
}
  0x85   : > { %s699_s25 = smov 128   ;;  %s700_s19 = smov 8  }
  0x86   : > { %489 = dma.vmem_to_hbm [thread:$0]  (%p1122_p3), %s1054_s22, 8192, %s1052_s26, %s368_s4, %s699_s25, %s699_s25, %s700_s19  }
  0x87 PF: > { %s398_s10 = sand.u32 1, %s671_s0   ;;  %p1123_p0 = scmp.ne.s32.totalorder %s1119_s13, 0 }
  0x88   : > { %p1124_p7 = scmp.ge.s32.totalorder %s691_s30, 2  ;;  %s399_s21 = scalar_lea.sflag [#allocation7], %s398_s10 }
  0x8a   : > { %p496_p10 = pnand %p1124_p7, %p1123_p0 }
  0x8c   : > { %666 = dma.done.wait (!%p496_p10), %s399_s21, 8192  }
  0x8d   : > { %668 = vsyncadd (!%p496_p10), %s399_s21, 4294959104  ;;  %s27_s30 = sadd.s32 1, %s691_s30   ;;  %s1125_s0 = smov %s675_s1 }
  0x8e   : > { %p24_p13 = scmp.ge.s32.totalorder %s27_s30, 4   ;;  %s1126_s1 = smov %s679_s27 }
  0x8f   : > { %s1127_s27 = smov %s792_s12  ;;  %s1128_s28 = smov %s687_s29 }
  0x90   : > { %s1129_s29 = smov %s1131_s6  ;;  %26 = sbr.rel (!%p24_p13) target bundleno = 28 (0x1c), region = 69 }
  0x97   :  { %404 = vsyncpa [#allocation6], 1 }
  0x98   :  { %406 = vsyncpa [#allocation6 + $0x1], 1 }
  0x99   :  { %407 = vsyncpa [#allocation7], 1 }
  0x9a   :  { %409 = vsyncpa [#allocation7 + $0x1], 1 }

</bundles_post_ra>
